<compile_context>
chip_gen: v6e
topology: v6e:2x2x1
jax: 0.10.0
libtpu: 0.0.40
codegen_flags: <defaults>
</compile_context>

<pallas_src>
import math

import jax
import jax.numpy as jnp
from jax.experimental import pallas as pl
from jax.experimental.pallas import tpu as pltpu


def _round_up(v, m):
    return ((v + m - 1) // m) * m


def _make_down_block_kernel(Wp, g, M, w_total, n_blocks, cins, cout_pad):
    """Fused kernel: `n_blocks` ConvBlocks on one batch chunk, lane-dense layout.

    Activation layout inside the kernel: (channels, bn * Lbuf) where the lane
    axis is the flattened (H+2, W+2) zero-padded image of each batch element,
    concatenated with per-element guard gaps.  A 3x3 tap (ky, kx) is a uniform
    lane offset of (ky-1)*Wp + (kx-1), so each tap is one static lane-slice
    feeding one small MXU matmul.
    """
    n_mid = min(2, max(n_blocks - 1, 0))
    offs = [(ky - 1) * Wp + (kx - 1) for ky in range(3) for kx in range(3)]

    def kernel(*refs):
        mask_ref = refs[0]                     # (1, M) f32: 1 = real pixel
        x_ref = refs[1]                        # (1, cin_pad, w_total) bf16
        param_refs = refs[2:2 + 2 * n_blocks]  # per block: weights, shift
        o_ref = refs[2 + 2 * n_blocks]         # (1, cout_pad, M) f32
        mid_refs = refs[3 + 2 * n_blocks:]     # intermediate VMEM buffers

        def conv_block(b, load_tap):
            w_ref = param_refs[2 * b]          # (cout_pad, 9*cin) bf16
            s_ref = param_refs[2 * b + 1]      # (cout_pad, 1) f32
            cin = cins[b]
            acc = None
            for t in range(9):
                tap = load_tap(g + offs[t])            # (cin, M) bf16
                w_t = w_ref[:, t * cin:(t + 1) * cin]  # (cout_pad, cin) bf16
                part = jnp.dot(w_t, tap, preferred_element_type=jnp.float32)
                acc = part if acc is None else acc + part
            # BN-folded bias + ReLU epilogue in f32.
            return jnp.maximum(acc + s_ref[...], 0.0)  # (cout_pad, M) f32

        # Block 0 reads straight from the (already padded + guarded) input.
        act = conv_block(0, lambda s: x_ref[0, :, s:s + M])

        for b in range(1, n_blocks):
            buf = mid_refs[(b - 1) % n_mid]
            # Halo-only zeroing: the interior is fully overwritten below.
            buf[:, 0:g] = jnp.zeros((cout_pad, g), buf.dtype)
            buf[:, g + M:] = jnp.zeros((cout_pad, w_total - g - M), buf.dtype)
            # Mask kills padding/guard columns so they act as the next block's
            # zero padding; store bf16 (MXU operand for the next block).
            buf[:, g:g + M] = (act * mask_ref[...]).astype(buf.dtype)
            act = conv_block(b, lambda s, _buf=buf: _buf[:, s:s + M])

        # Lane-dense output store; padding columns are dropped in the wrapper.
        o_ref[0] = act.astype(o_ref.dtype)

    return kernel, n_mid


def _fold_bn_into_conv(p, eps, cin_pad, cout_pad):
    """Fold eval-mode BatchNorm (and conv bias) into bf16 conv weights."""
    c_out, c_in = p["weight"].shape[0], p["weight"].shape[1]
    scale = p["gamma"] * jax.lax.rsqrt(p["running_var"] + eps)      # (Cout,)
    w = p["weight"] * scale[:, None, None, None]                    # (Cout,Cin,3,3)
    shift = scale * (p["bias"] - p["running_mean"]) + p["beta"]     # (Cout,)
    # (Cout,Cin,ky,kx) -> (Cout,ky,kx,Cin) -> (Cout, 9, Cin); column order (tap, ci).
    w_mat = jnp.transpose(w, (0, 2, 3, 1)).reshape(c_out, 9, c_in)
    w_mat = jnp.pad(w_mat, ((0, cout_pad - c_out), (0, 0), (0, cin_pad - c_in)))
    w_mat = w_mat.reshape(cout_pad, 9 * cin_pad)
    shift = jnp.pad(shift, (0, cout_pad - c_out)).reshape(cout_pad, 1)
    return w_mat.astype(jnp.bfloat16), shift.astype(jnp.float32)


def down_block_forward(x_nchw, params_list, eps=1e-5, num_batch_chunks=None):
    """DownBlock forward (NCHW in / NCHW out), fully fused in one pallas_call."""
    N, c_in, H, W = x_nchw.shape
    c_out = params_list[0]["weight"].shape[0]
    n_blocks = len(params_list)

    Hp, Wp = H + 2, W + 2
    Lpad = Hp * Wp              # flattened zero-padded image length
    A = H * Wp                  # accumulation-frame width per batch element
    g = Wp + 1                  # max |lane offset| of a 3x3 tap
    Lbuf = A + 2 * g            # = Lpad + 2: per-element guarded segment

    if num_batch_chunks is None:
        num_batch_chunks = 2 if (N >= 2 and N % 2 == 0) else 1
    if N % num_batch_chunks != 0:
        num_batch_chunks = 1
    bn = N // num_batch_chunks
    w_total = bn * Lbuf
    M = w_total - 2 * g

    cin_pad = _round_up(c_in, 8)
    cout_pad = _round_up(c_out, 8)
    cins = [cin_pad] + [cout_pad] * (n_blocks - 1)

    # ---- wrapper-side layout plumbing: padded, flattened, guarded, bf16 ----
    xp = jnp.pad(x_nchw.astype(jnp.float32),
                 ((0, 0), (0, cin_pad - c_in), (1, 1), (1, 1)))
    xp = xp.reshape(N, cin_pad, Lpad)
    xp = jnp.pad(xp, ((0, 0), (0, 0), (0, Lbuf - Lpad)))
    xp = xp.reshape(num_batch_chunks, bn, cin_pad, Lbuf)
    xp = jnp.transpose(xp, (0, 2, 1, 3)).reshape(num_batch_chunks, cin_pad, w_total)
    xp = xp.astype(jnp.bfloat16)

    # Interior mask in the accumulation frame (1 = real pixel, 0 = pad/guard).
    pos = jnp.arange(M)
    loc = pos % Lbuf
    mask = ((loc < A) & ((loc % Wp) < W)).astype(jnp.float32).reshape(1, M)

    folded = []
    for b, p in enumerate(params_list):
        w_mat, shift = _fold_bn_into_conv(p, eps, cins[b], cout_pad)
        folded += [w_mat, shift]

    kernel, n_mid = _make_down_block_kernel(Wp, g, M, w_total, n_blocks,
                                            cins, cout_pad)

    in_specs = [pl.BlockSpec((1, M), lambda i: (0, 0)),
                pl.BlockSpec((1, cin_pad, w_total), lambda i: (i, 0, 0))]
    for b in range(n_blocks):
        in_specs.append(pl.BlockSpec((cout_pad, 9 * cins[b]), lambda i: (0, 0)))
        in_specs.append(pl.BlockSpec((cout_pad, 1), lambda i: (0, 0)))

    scratch_shapes = [pltpu.VMEM((cout_pad, w_total), jnp.bfloat16)
                      for _ in range(n_mid)]

    # VMEM budget near the true footprint (+ headroom), instead of a 32 MiB floor.
    def nbytes(shape, dt):
        return math.prod(shape) * jnp.dtype(dt).itemsize

    est = 2 * nbytes((1, cin_pad, w_total), jnp.bfloat16)     # input (dbl-buffered)
    est += 2 * nbytes((1, M), jnp.float32)                    # mask
    est += 2 * nbytes((1, cout_pad, M), jnp.float32)          # output (dbl-buffered)
    est += 4 * nbytes((cout_pad, M), jnp.float32)             # acc / tap temporaries
    for b in range(n_blocks):
        est += 2 * (nbytes((cout_pad, 9 * cins[b]), jnp.bfloat16)
                    + nbytes((cout_pad, 1), jnp.float32))
    est += n_mid * nbytes((cout_pad, w_total), jnp.bfloat16)
    vmem_limit = int(min(max(4 * est, 4 * 1024 * 1024), 64 * 1024 * 1024))

    out = pl.pallas_call(
        kernel,
        out_shape=jax.ShapeDtypeStruct((num_batch_chunks, cout_pad, M),
                                       jnp.float32),
        grid_spec=pltpu.PrefetchScalarGridSpec(
            num_scalar_prefetch=0,
            grid=(num_batch_chunks,),
            in_specs=in_specs,
            out_specs=pl.BlockSpec((1, cout_pad, M), lambda i: (i, 0, 0)),
            scratch_shapes=scratch_shapes,
        ),
        compiler_params=pltpu.CompilerParams(
            dimension_semantics=("parallel",),
            vmem_limit_bytes=vmem_limit,
        ),
    )(mask, xp, *folded)

    # (chunks, cout_pad, M) -> (N, c_out, H, W): drop padded channels, pull each
    # batch element's accumulation frame, keep only interior columns.
    slabs = [out[:, :c_out, j * Lbuf: j * Lbuf + A] for j in range(bn)]
    y = jnp.stack(slabs, axis=1).reshape(N, c_out, H, Wp)
    return y[:, :, :, :W]


def _reference_forward(x, params_list, eps=1e-5):
    """Pure-JAX f32 reference: Conv2d(3x3, pad=1) -> BN(eval) -> ReLU, stacked."""
    y = x
    for p in params_list:
        y = jax.lax.conv_general_dilated(
            y, p["weight"], window_strides=(1, 1), padding="SAME",
            dimension_numbers=("NCHW", "OIHW", "NCHW"),
            precision=jax.lax.Precision.HIGHEST)
        y = y + p["bias"][None, :, None, None]
        scale = p["gamma"] / jnp.sqrt(p["running_var"] + eps)
        y = (y - p["running_mean"][None, :, None, None]) * scale[None, :, None, None]
        y = y + p["beta"][None, :, None, None]
        y = jnp.maximum(y, 0.0)
    return y


def init_conv_block_params(key, in_ch, out_ch):
    """Deterministic parameter init for one ConvBlock (conv + BN eval stats)."""
    k_w, k_b, k_g, k_be = jax.random.split(key, 4)
    fan_in = in_ch * 3 * 3
    bound = 1.0 / math.sqrt(fan_in)
    weight = jax.random.uniform(k_w, (out_ch, in_ch, 3, 3),
                                minval=-bound, maxval=bound, dtype=jnp.float32)
    bias = jax.random.uniform(k_b, (out_ch,), minval=-bound, maxval=bound,
                              dtype=jnp.float32)
    gamma = 1.0 + 0.1 * jax.random.normal(k_g, (out_ch,), dtype=jnp.float32)
    beta = 0.1 * jax.random.normal(k_be, (out_ch,), dtype=jnp.float32)
    running_mean = jnp.zeros((out_ch,), jnp.float32)
    running_var = jnp.ones((out_ch,), jnp.float32)
    return dict(weight=weight, bias=bias, gamma=gamma, beta=beta,
                running_mean=running_mean, running_var=running_var)


if __name__ == "__main__":
    # DownBlock(in_channels=4, out_channels=8), jump=2, batch=2, 16x16 spatial.
    key = jax.random.PRNGKey(0)
    k_x, k_p1, k_p2 = jax.random.split(key, 3)

    in_channels, out_channels = 4, 8
    x = jax.random.normal(k_x, (2, in_channels, 16, 16), dtype=jnp.float32)

    params = [
        init_conv_block_params(k_p1, in_channels, out_channels),
        init_conv_block_params(k_p2, out_channels, out_channels),
    ]

    fwd = jax.jit(down_block_forward)
    out = jax.block_until_ready(fwd(x, params))

    assert out.shape == (2, out_channels, 16, 16), out.shape
    assert bool(jnp.all(out >= 0.0))  # ReLU output is non-negative

    # bf16 operands / bf16 intermediate => loose tolerance vs the f32 reference.
    ref = _reference_forward(x, params)
    max_err = float(jnp.max(jnp.abs(out - ref)))
    assert max_err < 0.15, f"max abs error vs reference: {max_err}"

    print("KERNEL_OK")
</pallas_src>

<mosaic_0001>
module attributes {stable_mosaic.version = 11 : i64} {
  func.func @kernel(%arg0: i32, %arg1: memref<1x288xf32, #tpu.memory_space<vmem>>, %arg2: memref<1x8x326xbf16, #tpu.memory_space<vmem>>, %arg3: memref<8x72xbf16, #tpu.memory_space<vmem>>, %arg4: memref<8x1xf32, #tpu.memory_space<vmem>>, %arg5: memref<8x72xbf16, #tpu.memory_space<vmem>>, %arg6: memref<8x1xf32, #tpu.memory_space<vmem>>, %arg7: memref<1x8x288xf32, #tpu.memory_space<vmem>>, %arg8: memref<8x326xbf16, #tpu.memory_space<vmem>>) attributes {dimension_semantics = [#tpu.dimension_semantics<parallel>], iteration_bounds = array<i64: 2>, scalar_prefetch = 0 : i64, scratch_operands = 1 : i64, tpu.core_type = #tpu.core_type<tc>, window_params = [{pipeline_mode = #tpu.pipeline_mode<synchronous>, transform_indices = @transform_0, window_bounds = array<i64: 1, 288>}, {transform_indices = @transform_1, window_bounds = array<i64: 1, 8, 326>}, {pipeline_mode = #tpu.pipeline_mode<synchronous>, transform_indices = @transform_2, window_bounds = array<i64: 8, 72>}, {pipeline_mode = #tpu.pipeline_mode<synchronous>, transform_indices = @transform_3, window_bounds = array<i64: 8, 1>}, {pipeline_mode = #tpu.pipeline_mode<synchronous>, transform_indices = @transform_4, window_bounds = array<i64: 8, 72>}, {pipeline_mode = #tpu.pipeline_mode<synchronous>, transform_indices = @transform_5, window_bounds = array<i64: 8, 1>}, {transform_indices = @transform_6, window_bounds = array<i64: 1, 8, 288>}]} {
    %c0 = arith.constant 0 : index
    %c0_0 = arith.constant 0 : index
    %c0_1 = arith.constant 0 : index
    %0 = vector.load %arg2[%c0, %c0_0, %c0_1] : memref<1x8x326xbf16, #tpu.memory_space<vmem>>, vector<1x8x288xbf16>
    %1 = vector.shape_cast %0 : vector<1x8x288xbf16> to vector<8x288xbf16>
    %c0_2 = arith.constant 0 : index
    %c0_3 = arith.constant 0 : index
    %2 = vector.load %arg3[%c0_2, %c0_3] : memref<8x72xbf16, #tpu.memory_space<vmem>>, vector<8x8xbf16>
    %cst = arith.constant dense<0.000000e+00> : vector<8x288xf32>
    %3 = tpu.matmul %2, %1, %cst {dimension_numbers = #tpu.dot_dimension_numbers<[1], [0], [0], [1], [0, 0, 1, 1], [], []>} : vector<8x8xbf16>, vector<8x288xbf16>, vector<8x288xf32> -> vector<8x288xf32>
    %c0_4 = arith.constant 0 : index
    %c0_5 = arith.constant 0 : index
    %c1 = arith.constant 1 : index
    %4 = vector.load %arg2[%c0_4, %c0_5, %c1] : memref<1x8x326xbf16, #tpu.memory_space<vmem>>, vector<1x8x288xbf16>
    %5 = vector.shape_cast %4 : vector<1x8x288xbf16> to vector<8x288xbf16>
    %c0_6 = arith.constant 0 : index
    %c8 = arith.constant 8 : index
    %6 = vector.load %arg3[%c0_6, %c8] : memref<8x72xbf16, #tpu.memory_space<vmem>>, vector<8x8xbf16>
    %cst_7 = arith.constant dense<0.000000e+00> : vector<8x288xf32>
    %7 = tpu.matmul %6, %5, %cst_7 {dimension_numbers = #tpu.dot_dimension_numbers<[1], [0], [0], [1], [0, 0, 1, 1], [], []>} : vector<8x8xbf16>, vector<8x288xbf16>, vector<8x288xf32> -> vector<8x288xf32>
    %8 = arith.addf %3, %7 : vector<8x288xf32>
    %c0_8 = arith.constant 0 : index
    %c0_9 = arith.constant 0 : index
    %c2 = arith.constant 2 : index
    %9 = vector.load %arg2[%c0_8, %c0_9, %c2] : memref<1x8x326xbf16, #tpu.memory_space<vmem>>, vector<1x8x288xbf16>
    %10 = vector.shape_cast %9 : vector<1x8x288xbf16> to vector<8x288xbf16>
    %c0_10 = arith.constant 0 : index
    %c16 = arith.constant 16 : index
    %11 = vector.load %arg3[%c0_10, %c16] : memref<8x72xbf16, #tpu.memory_space<vmem>>, vector<8x8xbf16>
    %cst_11 = arith.constant dense<0.000000e+00> : vector<8x288xf32>
    %12 = tpu.matmul %11, %10, %cst_11 {dimension_numbers = #tpu.dot_dimension_numbers<[1], [0], [0], [1], [0, 0, 1, 1], [], []>} : vector<8x8xbf16>, vector<8x288xbf16>, vector<8x288xf32> -> vector<8x288xf32>
    %13 = arith.addf %8, %12 : vector<8x288xf32>
    %c0_12 = arith.constant 0 : index
    %c0_13 = arith.constant 0 : index
    %c18 = arith.constant 18 : index
    %14 = vector.load %arg2[%c0_12, %c0_13, %c18] : memref<1x8x326xbf16, #tpu.memory_space<vmem>>, vector<1x8x288xbf16>
    %15 = vector.shape_cast %14 : vector<1x8x288xbf16> to vector<8x288xbf16>
    %c0_14 = arith.constant 0 : index
    %c24 = arith.constant 24 : index
    %16 = vector.load %arg3[%c0_14, %c24] : memref<8x72xbf16, #tpu.memory_space<vmem>>, vector<8x8xbf16>
    %cst_15 = arith.constant dense<0.000000e+00> : vector<8x288xf32>
    %17 = tpu.matmul %16, %15, %cst_15 {dimension_numbers = #tpu.dot_dimension_numbers<[1], [0], [0], [1], [0, 0, 1, 1], [], []>} : vector<8x8xbf16>, vector<8x288xbf16>, vector<8x288xf32> -> vector<8x288xf32>
    %18 = arith.addf %13, %17 : vector<8x288xf32>
    %c0_16 = arith.constant 0 : index
    %c0_17 = arith.constant 0 : index
    %c19 = arith.constant 19 : index
    %19 = vector.load %arg2[%c0_16, %c0_17, %c19] : memref<1x8x326xbf16, #tpu.memory_space<vmem>>, vector<1x8x288xbf16>
    %20 = vector.shape_cast %19 : vector<1x8x288xbf16> to vector<8x288xbf16>
    %c0_18 = arith.constant 0 : index
    %c32 = arith.constant 32 : index
    %21 = vector.load %arg3[%c0_18, %c32] : memref<8x72xbf16, #tpu.memory_space<vmem>>, vector<8x8xbf16>
    %cst_19 = arith.constant dense<0.000000e+00> : vector<8x288xf32>
    %22 = tpu.matmul %21, %20, %cst_19 {dimension_numbers = #tpu.dot_dimension_numbers<[1], [0], [0], [1], [0, 0, 1, 1], [], []>} : vector<8x8xbf16>, vector<8x288xbf16>, vector<8x288xf32> -> vector<8x288xf32>
    %23 = arith.addf %18, %22 : vector<8x288xf32>
    %c0_20 = arith.constant 0 : index
    %c0_21 = arith.constant 0 : index
    %c20 = arith.constant 20 : index
    %24 = vector.load %arg2[%c0_20, %c0_21, %c20] : memref<1x8x326xbf16, #tpu.memory_space<vmem>>, vector<1x8x288xbf16>
    %25 = vector.shape_cast %24 : vector<1x8x288xbf16> to vector<8x288xbf16>
    %c0_22 = arith.constant 0 : index
    %c40 = arith.constant 40 : index
    %26 = vector.load %arg3[%c0_22, %c40] : memref<8x72xbf16, #tpu.memory_space<vmem>>, vector<8x8xbf16>
    %cst_23 = arith.constant dense<0.000000e+00> : vector<8x288xf32>
    %27 = tpu.matmul %26, %25, %cst_23 {dimension_numbers = #tpu.dot_dimension_numbers<[1], [0], [0], [1], [0, 0, 1, 1], [], []>} : vector<8x8xbf16>, vector<8x288xbf16>, vector<8x288xf32> -> vector<8x288xf32>
    %28 = arith.addf %23, %27 : vector<8x288xf32>
    %c0_24 = arith.constant 0 : index
    %c0_25 = arith.constant 0 : index
    %c36 = arith.constant 36 : index
    %29 = vector.load %arg2[%c0_24, %c0_25, %c36] : memref<1x8x326xbf16, #tpu.memory_space<vmem>>, vector<1x8x288xbf16>
    %30 = vector.shape_cast %29 : vector<1x8x288xbf16> to vector<8x288xbf16>
    %c0_26 = arith.constant 0 : index
    %c48 = arith.constant 48 : index
    %31 = vector.load %arg3[%c0_26, %c48] : memref<8x72xbf16, #tpu.memory_space<vmem>>, vector<8x8xbf16>
    %cst_27 = arith.constant dense<0.000000e+00> : vector<8x288xf32>
    %32 = tpu.matmul %31, %30, %cst_27 {dimension_numbers = #tpu.dot_dimension_numbers<[1], [0], [0], [1], [0, 0, 1, 1], [], []>} : vector<8x8xbf16>, vector<8x288xbf16>, vector<8x288xf32> -> vector<8x288xf32>
    %33 = arith.addf %28, %32 : vector<8x288xf32>
    %c0_28 = arith.constant 0 : index
    %c0_29 = arith.constant 0 : index
    %c37 = arith.constant 37 : index
    %34 = vector.load %arg2[%c0_28, %c0_29, %c37] : memref<1x8x326xbf16, #tpu.memory_space<vmem>>, vector<1x8x288xbf16>
    %35 = vector.shape_cast %34 : vector<1x8x288xbf16> to vector<8x288xbf16>
    %c0_30 = arith.constant 0 : index
    %c56 = arith.constant 56 : index
    %36 = vector.load %arg3[%c0_30, %c56] : memref<8x72xbf16, #tpu.memory_space<vmem>>, vector<8x8xbf16>
    %cst_31 = arith.constant dense<0.000000e+00> : vector<8x288xf32>
    %37 = tpu.matmul %36, %35, %cst_31 {dimension_numbers = #tpu.dot_dimension_numbers<[1], [0], [0], [1], [0, 0, 1, 1], [], []>} : vector<8x8xbf16>, vector<8x288xbf16>, vector<8x288xf32> -> vector<8x288xf32>
    %38 = arith.addf %33, %37 : vector<8x288xf32>
    %c0_32 = arith.constant 0 : index
    %c0_33 = arith.constant 0 : index
    %c38 = arith.constant 38 : index
    %39 = vector.load %arg2[%c0_32, %c0_33, %c38] : memref<1x8x326xbf16, #tpu.memory_space<vmem>>, vector<1x8x288xbf16>
    %40 = vector.shape_cast %39 : vector<1x8x288xbf16> to vector<8x288xbf16>
    %c0_34 = arith.constant 0 : index
    %c64 = arith.constant 64 : index
    %41 = vector.load %arg3[%c0_34, %c64] : memref<8x72xbf16, #tpu.memory_space<vmem>>, vector<8x8xbf16>
    %cst_35 = arith.constant dense<0.000000e+00> : vector<8x288xf32>
    %42 = tpu.matmul %41, %40, %cst_35 {dimension_numbers = #tpu.dot_dimension_numbers<[1], [0], [0], [1], [0, 0, 1, 1], [], []>} : vector<8x8xbf16>, vector<8x288xbf16>, vector<8x288xf32> -> vector<8x288xf32>
    %43 = arith.addf %38, %42 : vector<8x288xf32>
    %c0_36 = arith.constant 0 : index
    %c0_37 = arith.constant 0 : index
    %44 = vector.load %arg4[%c0_36, %c0_37] : memref<8x1xf32, #tpu.memory_space<vmem>>, vector<8x1xf32>
    %45 = vector.broadcast %44 : vector<8x1xf32> to vector<8x288xf32>
    %46 = arith.addf %43, %45 : vector<8x288xf32>
    %cst_38 = arith.constant 0.000000e+00 : f32
    %47 = vector.broadcast %cst_38 : f32 to vector<8x288xf32>
    %48 = arith.maximumf %46, %47 : vector<8x288xf32>
    %cst_39 = arith.constant 0.000000e+00 : bf16
    %49 = vector.broadcast %cst_39 : bf16 to vector<8x19xbf16>
    %c0_40 = arith.constant 0 : index
    %c0_41 = arith.constant 0 : index
    %50 = vector.load %arg8[%c0_40, %c0_41] : memref<8x326xbf16, #tpu.memory_space<vmem>>, vector<8x19xbf16>
    tpu.vector_store %arg8[%c0_40, %c0_41], %49 {strides = array<i32>} : memref<8x326xbf16, #tpu.memory_space<vmem>>, vector<8x19xbf16>,
    %cst_42 = arith.constant 0.000000e+00 : bf16
    %51 = vector.broadcast %cst_42 : bf16 to vector<8x19xbf16>
    %c0_43 = arith.constant 0 : index
    %c307 = arith.constant 307 : index
    %52 = vector.load %arg8[%c0_43, %c307] : memref<8x326xbf16, #tpu.memory_space<vmem>>, vector<8x19xbf16>
    tpu.vector_store %arg8[%c0_43, %c307], %51 {strides = array<i32>} : memref<8x326xbf16, #tpu.memory_space<vmem>>, vector<8x19xbf16>,
    %c0_44 = arith.constant 0 : index
    %c0_45 = arith.constant 0 : index
    %53 = vector.load %arg1[%c0_44, %c0_45] : memref<1x288xf32, #tpu.memory_space<vmem>>, vector<1x288xf32>
    %54 = vector.broadcast %53 : vector<1x288xf32> to vector<8x288xf32>
    %55 = arith.mulf %48, %54 : vector<8x288xf32>
    %56 = arith.truncf %55 : vector<8x288xf32> to vector<8x288xbf16>
    %c0_46 = arith.constant 0 : index
    %c19_47 = arith.constant 19 : index
    %57 = vector.load %arg8[%c0_46, %c19_47] : memref<8x326xbf16, #tpu.memory_space<vmem>>, vector<8x288xbf16>
    tpu.vector_store %arg8[%c0_46, %c19_47], %56 {strides = array<i32>} : memref<8x326xbf16, #tpu.memory_space<vmem>>, vector<8x288xbf16>,
    %c0_48 = arith.constant 0 : index
    %c0_49 = arith.constant 0 : index
    %58 = vector.load %arg8[%c0_48, %c0_49] : memref<8x326xbf16, #tpu.memory_space<vmem>>, vector<8x288xbf16>
    %c0_50 = arith.constant 0 : index
    %c0_51 = arith.constant 0 : index
    %59 = vector.load %arg5[%c0_50, %c0_51] : memref<8x72xbf16, #tpu.memory_space<vmem>>, vector<8x8xbf16>
    %cst_52 = arith.constant dense<0.000000e+00> : vector<8x288xf32>
    %60 = tpu.matmul %59, %58, %cst_52 {dimension_numbers = #tpu.dot_dimension_numbers<[1], [0], [0], [1], [0, 0, 1, 1], [], []>} : vector<8x8xbf16>, vector<8x288xbf16>, vector<8x288xf32> -> vector<8x288xf32>
    %c0_53 = arith.constant 0 : index
    %c1_54 = arith.constant 1 : index
    %61 = vector.load %arg8[%c0_53, %c1_54] : memref<8x326xbf16, #tpu.memory_space<vmem>>, vector<8x288xbf16>
    %c0_55 = arith.constant 0 : index
    %c8_56 = arith.constant 8 : index
    %62 = vector.load %arg5[%c0_55, %c8_56] : memref<8x72xbf16, #tpu.memory_space<vmem>>, vector<8x8xbf16>
    %cst_57 = arith.constant dense<0.000000e+00> : vector<8x288xf32>
    %63 = tpu.matmul %62, %61, %cst_57 {dimension_numbers = #tpu.dot_dimension_numbers<[1], [0], [0], [1], [0, 0, 1, 1], [], []>} : vector<8x8xbf16>, vector<8x288xbf16>, vector<8x288xf32> -> vector<8x288xf32>
    %64 = arith.addf %60, %63 : vector<8x288xf32>
    %c0_58 = arith.constant 0 : index
    %c2_59 = arith.constant 2 : index
    %65 = vector.load %arg8[%c0_58, %c2_59] : memref<8x326xbf16, #tpu.memory_space<vmem>>, vector<8x288xbf16>
    %c0_60 = arith.constant 0 : index
    %c16_61 = arith.constant 16 : index
    %66 = vector.load %arg5[%c0_60, %c16_61] : memref<8x72xbf16, #tpu.memory_space<vmem>>, vector<8x8xbf16>
    %cst_62 = arith.constant dense<0.000000e+00> : vector<8x288xf32>
    %67 = tpu.matmul %66, %65, %cst_62 {dimension_numbers = #tpu.dot_dimension_numbers<[1], [0], [0], [1], [0, 0, 1, 1], [], []>} : vector<8x8xbf16>, vector<8x288xbf16>, vector<8x288xf32> -> vector<8x288xf32>
    %68 = arith.addf %64, %67 : vector<8x288xf32>
    %c0_63 = arith.constant 0 : index
    %c18_64 = arith.constant 18 : index
    %69 = vector.load %arg8[%c0_63, %c18_64] : memref<8x326xbf16, #tpu.memory_space<vmem>>, vector<8x288xbf16>
    %c0_65 = arith.constant 0 : index
    %c24_66 = arith.constant 24 : index
    %70 = vector.load %arg5[%c0_65, %c24_66] : memref<8x72xbf16, #tpu.memory_space<vmem>>, vector<8x8xbf16>
    %cst_67 = arith.constant dense<0.000000e+00> : vector<8x288xf32>
    %71 = tpu.matmul %70, %69, %cst_67 {dimension_numbers = #tpu.dot_dimension_numbers<[1], [0], [0], [1], [0, 0, 1, 1], [], []>} : vector<8x8xbf16>, vector<8x288xbf16>, vector<8x288xf32> -> vector<8x288xf32>
    %72 = arith.addf %68, %71 : vector<8x288xf32>
    %c0_68 = arith.constant 0 : index
    %c19_69 = arith.constant 19 : index
    %73 = vector.load %arg8[%c0_68, %c19_69] : memref<8x326xbf16, #tpu.memory_space<vmem>>, vector<8x288xbf16>
    %c0_70 = arith.constant 0 : index
    %c32_71 = arith.constant 32 : index
    %74 = vector.load %arg5[%c0_70, %c32_71] : memref<8x72xbf16, #tpu.memory_space<vmem>>, vector<8x8xbf16>
    %cst_72 = arith.constant dense<0.000000e+00> : vector<8x288xf32>
    %75 = tpu.matmul %74, %73, %cst_72 {dimension_numbers = #tpu.dot_dimension_numbers<[1], [0], [0], [1], [0, 0, 1, 1], [], []>} : vector<8x8xbf16>, vector<8x288xbf16>, vector<8x288xf32> -> vector<8x288xf32>
    %76 = arith.addf %72, %75 : vector<8x288xf32>
    %c0_73 = arith.constant 0 : index
    %c20_74 = arith.constant 20 : index
    %77 = vector.load %arg8[%c0_73, %c20_74] : memref<8x326xbf16, #tpu.memory_space<vmem>>, vector<8x288xbf16>
    %c0_75 = arith.constant 0 : index
    %c40_76 = arith.constant 40 : index
    %78 = vector.load %arg5[%c0_75, %c40_76] : memref<8x72xbf16, #tpu.memory_space<vmem>>, vector<8x8xbf16>
    %cst_77 = arith.constant dense<0.000000e+00> : vector<8x288xf32>
    %79 = tpu.matmul %78, %77, %cst_77 {dimension_numbers = #tpu.dot_dimension_numbers<[1], [0], [0], [1], [0, 0, 1, 1], [], []>} : vector<8x8xbf16>, vector<8x288xbf16>, vector<8x288xf32> -> vector<8x288xf32>
    %80 = arith.addf %76, %79 : vector<8x288xf32>
    %c0_78 = arith.constant 0 : index
    %c36_79 = arith.constant 36 : index
    %81 = vector.load %arg8[%c0_78, %c36_79] : memref<8x326xbf16, #tpu.memory_space<vmem>>, vector<8x288xbf16>
    %c0_80 = arith.constant 0 : index
    %c48_81 = arith.constant 48 : index
    %82 = vector.load %arg5[%c0_80, %c48_81] : memref<8x72xbf16, #tpu.memory_space<vmem>>, vector<8x8xbf16>
    %cst_82 = arith.constant dense<0.000000e+00> : vector<8x288xf32>
    %83 = tpu.matmul %82, %81, %cst_82 {dimension_numbers = #tpu.dot_dimension_numbers<[1], [0], [0], [1], [0, 0, 1, 1], [], []>} : vector<8x8xbf16>, vector<8x288xbf16>, vector<8x288xf32> -> vector<8x288xf32>
    %84 = arith.addf %80, %83 : vector<8x288xf32>
    %c0_83 = arith.constant 0 : index
    %c37_84 = arith.constant 37 : index
    %85 = vector.load %arg8[%c0_83, %c37_84] : memref<8x326xbf16, #tpu.memory_space<vmem>>, vector<8x288xbf16>
    %c0_85 = arith.constant 0 : index
    %c56_86 = arith.constant 56 : index
    %86 = vector.load %arg5[%c0_85, %c56_86] : memref<8x72xbf16, #tpu.memory_space<vmem>>, vector<8x8xbf16>
    %cst_87 = arith.constant dense<0.000000e+00> : vector<8x288xf32>
    %87 = tpu.matmul %86, %85, %cst_87 {dimension_numbers = #tpu.dot_dimension_numbers<[1], [0], [0], [1], [0, 0, 1, 1], [], []>} : vector<8x8xbf16>, vector<8x288xbf16>, vector<8x288xf32> -> vector<8x288xf32>
    %88 = arith.addf %84, %87 : vector<8x288xf32>
    %c0_88 = arith.constant 0 : index
    %c38_89 = arith.constant 38 : index
    %89 = vector.load %arg8[%c0_88, %c38_89] : memref<8x326xbf16, #tpu.memory_space<vmem>>, vector<8x288xbf16>
    %c0_90 = arith.constant 0 : index
    %c64_91 = arith.constant 64 : index
    %90 = vector.load %arg5[%c0_90, %c64_91] : memref<8x72xbf16, #tpu.memory_space<vmem>>, vector<8x8xbf16>
    %cst_92 = arith.constant dense<0.000000e+00> : vector<8x288xf32>
    %91 = tpu.matmul %90, %89, %cst_92 {dimension_numbers = #tpu.dot_dimension_numbers<[1], [0], [0], [1], [0, 0, 1, 1], [], []>} : vector<8x8xbf16>, vector<8x288xbf16>, vector<8x288xf32> -> vector<8x288xf32>
    %92 = arith.addf %88, %91 : vector<8x288xf32>
    %c0_93 = arith.constant 0 : index
    %c0_94 = arith.constant 0 : index
    %93 = vector.load %arg6[%c0_93, %c0_94] : memref<8x1xf32, #tpu.memory_space<vmem>>, vector<8x1xf32>
    %94 = vector.broadcast %93 : vector<8x1xf32> to vector<8x288xf32>
    %95 = arith.addf %92, %94 : vector<8x288xf32>
    %cst_95 = arith.constant 0.000000e+00 : f32
    %96 = vector.broadcast %cst_95 : f32 to vector<8x288xf32>
    %97 = arith.maximumf %95, %96 : vector<8x288xf32>
    %c0_96 = arith.constant 0 : index
    %c0_97 = arith.constant 0 : index
    %c0_98 = arith.constant 0 : index
    %98 = vector.load %arg7[%c0_96, %c0_97, %c0_98] : memref<1x8x288xf32, #tpu.memory_space<vmem>>, vector<1x8x288xf32>
    %99 = vector.shape_cast %98 : vector<1x8x288xf32> to vector<8x288xf32>
    %100 = vector.shape_cast %97 : vector<8x288xf32> to vector<1x8x288xf32>
    tpu.vector_store %arg7[%c0_96, %c0_97, %c0_98], %100 {strides = array<i32>} : memref<1x8x288xf32, #tpu.memory_space<vmem>>, vector<1x8x288xf32>,
    return
  }
  func.func @transform_0(%arg0: i32) -> (i32, i32) {
    %c0_i32 = arith.constant 0 : i32
    %c0_i32_0 = arith.constant 0 : i32
    %c0_i32_1 = arith.constant 0 : i32
    return %c0_i32, %c0_i32_0 : i32, i32
  }
  func.func @transform_1(%arg0: i32) -> (i32, i32, i32) {
    %c0_i32 = arith.constant 0 : i32
    %c0_i32_0 = arith.constant 0 : i32
    %c0_i32_1 = arith.constant 0 : i32
    return %arg0, %c0_i32, %c0_i32_0 : i32, i32, i32
  }
  func.func @transform_2(%arg0: i32) -> (i32, i32) {
    %c0_i32 = arith.constant 0 : i32
    %c0_i32_0 = arith.constant 0 : i32
    %c0_i32_1 = arith.constant 0 : i32
    return %c0_i32, %c0_i32_0 : i32, i32
  }
  func.func @transform_3(%arg0: i32) -> (i32, i32) {
    %c0_i32 = arith.constant 0 : i32
    %c0_i32_0 = arith.constant 0 : i32
    %c0_i32_1 = arith.constant 0 : i32
    return %c0_i32, %c0_i32_0 : i32, i32
  }
  func.func @transform_4(%arg0: i32) -> (i32, i32) {
    %c0_i32 = arith.constant 0 : i32
    %c0_i32_0 = arith.constant 0 : i32
    %c0_i32_1 = arith.constant 0 : i32
    return %c0_i32, %c0_i32_0 : i32, i32
  }
  func.func @transform_5(%arg0: i32) -> (i32, i32) {
    %c0_i32 = arith.constant 0 : i32
    %c0_i32_0 = arith.constant 0 : i32
    %c0_i32_1 = arith.constant 0 : i32
    return %c0_i32, %c0_i32_0 : i32, i32
  }
  func.func @transform_6(%arg0: i32) -> (i32, i32, i32) {
    %c0_i32 = arith.constant 0 : i32
    %c0_i32_0 = arith.constant 0 : i32
    %c0_i32_1 = arith.constant 0 : i32
    return %arg0, %c0_i32, %c0_i32_0 : i32, i32, i32
  }
}

</mosaic_0001>

<bundles_post_ra>
// kernel: down_block_forward.1
= control target key start
LH: loop header
LB: loop body
LE: loop exit
PB: predicated region body
PF: predicated region fallthrough
CT: control target
= control target key end

     0   :  { %s2622_s21 = smov 0   ;;  %s2964_s0 = inlined_call_operand.vmem [shape: f32[1,288], index: 0, kind: input, shape index: {}]   ;;  %s2965_s1 = inlined_call_operand.vmem [shape: bf16[2,8,326], index: 1, kind: input, shape index: {}]   ;;  %s2966_s2 = inlined_call_operand.vmem [shape: bf16[8,72], index: 2, kind: input, shape index: {}]   ;;  %s2967_s3 = inlined_call_operand.vmem [shape: f32[8,1], index: 3, kind: input, shape index: {}]   ;;  %s2968_s4 = inlined_call_operand.vmem [shape: bf16[8,72], index: 4, kind: input, shape index: {}]   ;;  %s2969_s5 = inlined_call_operand.vmem [shape: f32[8,1], index: 5, kind: input, shape index: {}]   ;;  %s2970_s6 = inlined_call_operand.vmem [shape: f32[2,8,288], index: 6, kind: output, shape index: {}]  }
   0x1 LB: > { %s2301_s22 = sadd.s32 4294967295, %s2565_s21   ;;  %p2305_p0 = scmp.ge.s32.totalorder %s2565_s21, 1  ;;  %s2565_s21 = sphi %s2622_s21, %s16_s21  }
   0x2   : > { %p212_p1 = scmp.lt.s32.totalorder %s2565_s21, 3 }
   0x4   : > { %p213_p2 = pnand %p2305_p0, %p212_p1 }
   0x5   : > { %p242_p3 = scmp.lt.s32.totalorder (!%p213_p2), %s2301_s22, 1  ;;  %s2570_s29 = smov (!%p213_p2), 127  }
   0x6   : > { %216 = sbr.rel (%p213_p2) target bundleno = 929 (0x3a1), region = 44  ;;  %s2571_s30 = smov (!%p213_p2), 120  }
   0x7   : > { %s2572_s7 = smov (!%p213_p2), 126   ;;  %s2573_s8 = smov (!%p213_p2), 112  }
   0x8   : > { %s2574_s9 = smov (!%p213_p2), 110   ;;  %s2575_s10 = smov (!%p213_p2), 104  }
   0x9   : > { %s2576_s11 = smov (!%p213_p2), 109   ;;  %s2577_s12 = smov (!%p213_p2), 96  }
   0xa   : > { %s2578_s13 = smov (!%p213_p2), 108   ;;  %s2579_s14 = smov (!%p213_p2), 88  }
   0xb   : > { %v2567_v0 = vmov 0.0   ;;  %s2972_s22 = smov (!%p242_p3, %s2301_s22), 1  ;;  %vm2568_vm0 = vmmov 0   ;;  %v2569_v1 = vmov 0   ;;  %v2644_v2 = vld [vmem:[%s2966_s2] sm:$0xf] }
   0xc   : > { %2412 = vmatprep.subr.bf16.mxu1 %v2567_v0  ;;  %2414 = vmatprep.mubr.msk.bf16.mxu1 %vm2568_vm0, %v2567_v0  ;;  %s2520_s23 = smul.u32 12, %s2972_s22  ;;  %v2308_v6 = vcombine.low %v2644_v2, %v2644_v2  ;;  %s2580_s15 = smov 92   ;;  %v1215_v8 = vld [vmem:[%s2967_s3] sm:$0xff]  ;;  %vm282_vm1 = vcmask 1043456   ;;  %vm278_vm2 = vcmask 64512   ;;  %vm275_vm3 = vcmask 1039360  }
   0xd   : > { %324 = vmatprep.mubr.bf16.mxu0 %v2569_v1  ;;  %2550 = vset.pattern.permute.xlu0 %v2569_v1  ;;  %s2581_s16 = smov 80   ;;  %s2582_s17 = smov 91   ;;  %vm474_vm4 = vcmask 1031168   ;;  %vm581_vm5 = vcmask 900096   ;;  %vm688_vm6 = vcmask 891904   ;;  %vm795_vm7 = vcmask 883712  }
   0xe   : > { %s246_s26 = scalar_lea.vmem %s2965_s1, %s2520_s23  ;;  %s2583_s18 = smov 72   ;;  %vm902_vm8 = vcmask 752640   ;;  %vm1009_vm9 = vcmask 744448   ;;  %vm1116_vm10 = vcmask 736256   ;;  %vm1227_vm11 = vcmask 150528  }
   0xf   : > { %v2646_v3 = vld [vmem:[%s246_s26 + $0x8] ss:$0 sps:$4 sm:$0xff]   ;;  %v253_v4 = vld [vmem:[%s246_s26] sm:$0xff]  ;;  %s2584_s19 = smov 90   ;;  %s2585_s20 = smov 64   ;;  %vm1229_vm12 = vcmask 568728  }
  0x10   : > { %v2648_v5 = vcombine.low %v253_v4, %v253_v4  ;;  %273 = vrot.lane.b32.xlu1 %v2646_v3, %s2570_s29  ;;  %v2656_v7 = vcombine.high %v253_v4, %v253_v4  ;;  %v383_v12 = vsel %vm282_vm1, %v2646_v3, 0  ;;  %1228 = vst.msk [vmem:[#allocation2] sm:$0xf] %vm1227_vm11, %v2569_v1  ;;  %s2586_s27 = smov 19   ;;  %vm1272_vm13 = vcmask 1043608  }
  0x11   : > { %1230 = vst.msk [vmem:[#allocation2 + $0x8] sm:$0xf] %vm1229_vm12, %v2569_v1  ;;  %vm1273_vm14 = vcmask 1047556   ;;  %vm1267_vm15 = vcmask 154624   ;;  %vm1276_vm12 = vcmask 412672  }
  0x12   : > { %269 = vrot.lane.b32.xlu0 %v2648_v5, %s2570_s29  ;;  %v377_v20 = vsel %vm282_vm1, %v2648_v5, 0  ;;  %vm1274_vm11 = vmor %vm1273_vm14, %vm1272_vm13 }
  0x14   : > { %259 = vrot.lane.b32.xlu1 %v2308_v6, %s2571_s30 }
  0x16   : > { %271 = vrot.lane.b32.xlu0 %v2656_v7, %s2570_s29 }
  0x18   : > { %470 = vrot.lane.b32.xlu1 %v2656_v7, %s2572_s7 }
  0x1a   : > { %468 = vrot.lane.b32.xlu0 %v2648_v5, %s2572_s7 }
  0x1c   : > { %466 = vrot.lane.b32.xlu1 %v2308_v6, %s2573_s8 }
  0x1e   : > { %472 = vrot.lane.b32.xlu0 %v2646_v3, %s2572_s7 }
  0x20   : > { %577 = vrot.lane.b32.xlu1 %v2656_v7, %s2574_s9 }
  0x22   : > { %575 = vrot.lane.b32.xlu0 %v2648_v5, %s2574_s9 }
  0x24   : > { %573 = vrot.lane.b32.xlu1 %v2308_v6, %s2575_s10 }
  0x26   : > { %579 = vrot.lane.b32.xlu0 %v2646_v3, %s2574_s9 }
  0x28   : > { %684 = vrot.lane.b32.xlu1 %v2656_v7, %s2576_s11 }
  0x2a   : > { %682 = vrot.lane.b32.xlu0 %v2648_v5, %s2576_s11 }
  0x2c   : > { %680 = vrot.lane.b32.xlu1 %v2308_v6, %s2577_s12 }
  0x2e   : > { %686 = vrot.lane.b32.xlu0 %v2646_v3, %s2576_s11 }
  0x30   : > { %791 = vrot.lane.b32.xlu1 %v2656_v7, %s2578_s13 }
  0x32   : > { %789 = vrot.lane.b32.xlu0 %v2648_v5, %s2578_s13 }
  0x34   : > { %787 = vrot.lane.b32.xlu1 %v2308_v6, %s2579_s14 }
  0x36   : > { %793 = vrot.lane.b32.xlu0 %v2646_v3, %s2578_s13 }
  0x38   : > { %898 = vrot.lane.b32.xlu1 %v2656_v7, %s2580_s15 }
  0x3a   : > { %896 = vrot.lane.b32.xlu0 %v2648_v5, %s2580_s15 }
  0x3c   : > { %894 = vrot.lane.b32.xlu1 %v2308_v6, %s2581_s16 }
  0x3e   : > { %900 = vrot.lane.b32.xlu0 %v2646_v3, %s2580_s15 }
  0x40   : > { %1005 = vrot.lane.b32.xlu1 %v2656_v7, %s2582_s17 }
  0x42   : > { %1003 = vrot.lane.b32.xlu0 %v2648_v5, %s2582_s17 }
  0x44   : > { %1001 = vrot.lane.b32.xlu1 %v2308_v6, %s2583_s18 }
  0x46   : > { %1007 = vrot.lane.b32.xlu0 %v2646_v3, %s2582_s17 }
  0x48   : > { %1112 = vrot.lane.b32.xlu1 %v2656_v7, %s2584_s19 }
  0x4a   : > { %1110 = vrot.lane.b32.xlu0 %v2648_v5, %s2584_s19 }
  0x4c   : > { %1108 = vrot.lane.b32.xlu1 %v2308_v6, %s2585_s20 }
  0x4e   : > { %1114 = vrot.lane.b32.xlu0 %v2646_v3, %s2584_s19 }
  0x52   : > { %1218 = vperm.xlu0 %2550, %v1215_v8  }
  0x82   : > { %v274_v9 = vpop.permute.xlu1 %273 }
  0x83   : > { %v290_v11 = vsel %vm282_vm1, %v274_v9, 0 }
  0x84   : > { %v270_v10 = vpop.permute.xlu0 %269  ;;  %2413 = vmatpush3.bf16.msra.mxu1 %v290_v11 }
  0x85   : > { %2418 = vmatprep.subr.bf16.mxu1 %v2567_v0 }
  0x86   : > { %v260_v13 = vpop.permute.xlu1 %259 }
  0x87   : > { %2415 = vmatmul.mubr.msk.bf16.vlgmr.msra.gmra.mxu1 %vm278_vm2, %v260_v13 }
  0x88   : > { %v272_v14 = vpop.permute.xlu0 %271  ;;  %2419 = vmatpush3.bf16.msra.mxu1 %v383_v12  ;;  %2420 = vmatprep.mubr.msk.bf16.mxu1 %vm2568_vm0, %v2567_v0 }
  0x89   : > { %v277_v15 = vsel %vm275_vm3, %v272_v14, %v274_v9  ;;  %v276_v16 = vsel %vm275_vm3, %v270_v10, %v272_v14  ;;  %2424 = vmatprep.subr.bf16.mxu1 %v2567_v0 }
  0x8a   : > { %2312 = vmatprep.subr.msk.bf16.mxu0 %vm282_vm1, %v277_v15  ;;  %v284_v17 = vsel %vm282_vm1, %v276_v16, 0  ;;  %v471_v18 = vpop.permute.xlu1 %470 }
  0x8b   : > { %307 = vmatpush1.bf16.msra.mxu0 %v284_v17 }
  0x8c   : > { %v469_v19 = vpop.permute.xlu0 %468  ;;  %2315 = vmatprep.subr.msk.bf16.mxu0 %vm282_vm1, %v2656_v7 }
  0x8d   : > { %v475_v23 = vsel %vm474_vm4, %v469_v19, %v471_v18 }
  0x8e   : > { %2313 = vmatmul.mubr.msk.bf16.vlgmr.msra.gmra.mxu0 %vm278_vm2, %v260_v13  ;;  %v467_v21 = vpop.permute.xlu1 %466  ;;  %v481_v27 = vsel %vm282_vm1, %v475_v23, 0 }
  0x8f   : > { %400 = vmatpush1.bf16.msra.mxu0 %v377_v20  ;;  %417 = vmatprep.mubr.bf16.mxu0 %v2569_v1 }
  0x90   : > { %2421 = vmatmul.mubr.msk.bf16.vlgmr.msra.gmra.mxu1 %vm278_vm2, %v2644_v2  ;;  %v473_v22 = vpop.permute.xlu0 %472 }
  0x91   : > { %v476_v24 = vsel %vm474_vm4, %v471_v18, %v473_v22  ;;  %v487_v25 = vsel %vm282_vm1, %v473_v22, 0  ;;  %2426 = vmatprep.mubr.msk.bf16.mxu1 %vm2568_vm0, %v2567_v0 }
  0x92   : > { %2318 = vmatprep.subr.msk.bf16.mxu0 %vm282_vm1, %v476_v24  ;;  %2425 = vmatpush3.bf16.msra.mxu1 %v487_v25  ;;  %v578_v26 = vpop.permute.xlu1 %577 }
  0x93   : > { %2430 = vmatprep.subr.bf16.mxu1 %v2567_v0 }
  0x94   : > { %v576_v28 = vpop.permute.xlu0 %575 }
  0x95   : > { %v582_v31 = vsel %vm581_vm5, %v576_v28, %v578_v26 }
  0x96   : > { %2316 = vmatmul.mubr.msk.bf16.vlgmr.msra.gmra.mxu0 %vm278_vm2, %v2644_v2  ;;  %v574_v29 = vpop.permute.xlu1 %573  ;;  %v588_v35 = vsel %vm282_vm1, %v582_v31, 0 }
  0x97   : > { %504 = vmatpush1.bf16.msra.mxu0 %v481_v27  ;;  %521 = vmatprep.mubr.bf16.mxu0 %v2569_v1 }
  0x98   : > { %2427 = vmatmul.mubr.msk.bf16.vlgmr.msra.gmra.mxu1 %vm278_vm2, %v467_v21  ;;  %v580_v30 = vpop.permute.xlu0 %579 }
  0x99   : > { %v583_v32 = vsel %vm581_vm5, %v578_v26, %v580_v30  ;;  %v594_v33 = vsel %vm282_vm1, %v580_v30, 0  ;;  %2432 = vmatprep.mubr.msk.bf16.mxu1 %vm2568_vm0, %v2567_v0 }
  0x9a   : > { %2321 = vmatprep.subr.msk.bf16.mxu0 %vm282_vm1, %v583_v32  ;;  %2431 = vmatpush3.bf16.msra.mxu1 %v594_v33  ;;  %v685_v34 = vpop.permute.xlu1 %684 }
  0x9b   : > { %2436 = vmatprep.subr.bf16.mxu1 %v2567_v0 }
  0x9c   : > { %v683_v36 = vpop.permute.xlu0 %682 }
  0x9d   : > { %v689_v39 = vsel %vm688_vm6, %v683_v36, %v685_v34 }
  0x9e   : > { %2319 = vmatmul.mubr.msk.bf16.vlgmr.msra.gmra.mxu0 %vm278_vm2, %v467_v21  ;;  %v681_v37 = vpop.permute.xlu1 %680  ;;  %v695_v43 = vsel %vm282_vm1, %v689_v39, 0 }
  0x9f   : > { %611 = vmatpush1.bf16.msra.mxu0 %v588_v35  ;;  %628 = vmatprep.mubr.bf16.mxu0 %v2569_v1 }
  0xa0   : > { %2433 = vmatmul.mubr.msk.bf16.vlgmr.msra.gmra.mxu1 %vm278_vm2, %v574_v29  ;;  %v687_v38 = vpop.permute.xlu0 %686 }
  0xa1   : > { %v690_v40 = vsel %vm688_vm6, %v685_v34, %v687_v38  ;;  %v701_v41 = vsel %vm282_vm1, %v687_v38, 0  ;;  %2438 = vmatprep.mubr.msk.bf16.mxu1 %vm2568_vm0, %v2567_v0 }
  0xa2   : > { %2324 = vmatprep.subr.msk.bf16.mxu0 %vm282_vm1, %v690_v40  ;;  %2437 = vmatpush3.bf16.msra.mxu1 %v701_v41  ;;  %v792_v42 = vpop.permute.xlu1 %791 }
  0xa3   : > { %2442 = vmatprep.subr.bf16.mxu1 %v2567_v0 }
  0xa4   : > { %v790_v44 = vpop.permute.xlu0 %789 }
  0xa5   : > { %v796_v47 = vsel %vm795_vm7, %v790_v44, %v792_v42 }
  0xa6   : > { %2322 = vmatmul.mubr.msk.bf16.vlgmr.msra.gmra.mxu0 %vm278_vm2, %v574_v29  ;;  %v788_v45 = vpop.permute.xlu1 %787  ;;  %v802_v51 = vsel %vm282_vm1, %v796_v47, 0 }
  0xa7   : > { %718 = vmatpush1.bf16.msra.mxu0 %v695_v43  ;;  %735 = vmatprep.mubr.bf16.mxu0 %v2569_v1 }
  0xa8   : > { %2439 = vmatmul.mubr.msk.bf16.vlgmr.msra.gmra.mxu1 %vm278_vm2, %v681_v37  ;;  %v794_v46 = vpop.permute.xlu0 %793 }
  0xa9   : > { %v797_v48 = vsel %vm795_vm7, %v792_v42, %v794_v46  ;;  %v808_v49 = vsel %vm282_vm1, %v794_v46, 0  ;;  %2444 = vmatprep.mubr.msk.bf16.mxu1 %vm2568_vm0, %v2567_v0 }
  0xaa   : > { %2327 = vmatprep.subr.msk.bf16.mxu0 %vm282_vm1, %v797_v48  ;;  %2443 = vmatpush3.bf16.msra.mxu1 %v808_v49  ;;  %v899_v50 = vpop.permute.xlu1 %898 }
  0xab   : > { %2448 = vmatprep.subr.bf16.mxu1 %v2567_v0 }
  0xac   : > { %v897_v52 = vpop.permute.xlu0 %896 }
  0xad   : > { %v903_v55 = vsel %vm902_vm8, %v897_v52, %v899_v50 }
  0xae   : > { %2325 = vmatmul.mubr.msk.bf16.vlgmr.msra.gmra.mxu0 %vm278_vm2, %v681_v37  ;;  %v895_v53 = vpop.permute.xlu1 %894  ;;  %v909_v59 = vsel %vm282_vm1, %v903_v55, 0 }
  0xaf   : > { %825 = vmatpush1.bf16.msra.mxu0 %v802_v51  ;;  %842 = vmatprep.mubr.bf16.mxu0 %v2569_v1 }
  0xb0   : > { %2445 = vmatmul.mubr.msk.bf16.vlgmr.msra.gmra.mxu1 %vm278_vm2, %v788_v45  ;;  %v901_v54 = vpop.permute.xlu0 %900 }
  0xb1   : > { %v904_v56 = vsel %vm902_vm8, %v899_v50, %v901_v54  ;;  %v915_v57 = vsel %vm282_vm1, %v901_v54, 0  ;;  %2450 = vmatprep.mubr.msk.bf16.mxu1 %vm2568_vm0, %v2567_v0 }
  0xb2   : > { %2330 = vmatprep.subr.msk.bf16.mxu0 %vm282_vm1, %v904_v56  ;;  %2449 = vmatpush3.bf16.msra.mxu1 %v915_v57  ;;  %v1006_v58 = vpop.permute.xlu1 %1005 }
  0xb3   : > { %2454 = vmatprep.subr.bf16.mxu1 %v2567_v0 }
  0xb4   : > { %v1004_v60 = vpop.permute.xlu0 %1003 }
  0xb5   : > { %v1010_v63 = vsel %vm1009_vm9, %v1004_v60, %v1006_v58 }
  0xb6   : > { %2328 = vmatmul.mubr.msk.bf16.vlgmr.msra.gmra.mxu0 %vm278_vm2, %v788_v45  ;;  %v1002_v62 = vpop.permute.xlu1 %1001  ;;  %v1016_v4 = vsel %vm282_vm1, %v1010_v63, 0 }
  0xb7   : > { %932 = vmatpush1.bf16.msra.mxu0 %v909_v59  ;;  %949 = vmatprep.mubr.bf16.mxu0 %v2569_v1 }
  0xb8   : > { %2451 = vmatmul.mubr.msk.bf16.vlgmr.msra.gmra.mxu1 %vm278_vm2, %v895_v53  ;;  %v1008_v61 = vpop.permute.xlu0 %1007 }
  0xb9   : > { %v1011_v2 = vsel %vm1009_vm9, %v1006_v58, %v1008_v61  ;;  %v1022_v3 = vsel %vm282_vm1, %v1008_v61, 0  ;;  %2456 = vmatprep.mubr.msk.bf16.mxu1 %vm2568_vm0, %v2567_v0 }
  0xba   : > { %2333 = vmatprep.subr.msk.bf16.mxu0 %vm282_vm1, %v1011_v2  ;;  %2455 = vmatpush3.bf16.msra.mxu1 %v1022_v3  ;;  %v1113_v6 = vpop.permute.xlu1 %1112 }
  0xbb   : > { %2460 = vmatprep.subr.bf16.mxu1 %v2567_v0 }
  0xbc   : > { %v1111_v5 = vpop.permute.xlu0 %1110 }
  0xbd   : > { %v1117_v8 = vsel %vm1116_vm10, %v1111_v5, %v1113_v6 }
  0xbe   : > { %2331 = vmatmul.mubr.msk.bf16.vlgmr.msra.gmra.mxu0 %vm278_vm2, %v895_v53  ;;  %v1123_v11 = vsel %vm282_vm1, %v1117_v8, 0  ;;  %v1109_v12 = vpop.permute.xlu1 %1108 }
  0xbf   : > { %1039 = vmatpush1.bf16.msra.mxu0 %v1016_v4  ;;  %1056 = vmatprep.mubr.bf16.mxu0 %v2569_v1 }
  0xc0   : > { %2457 = vmatmul.mubr.msk.bf16.vlgmr.msra.gmra.mxu1 %vm278_vm2, %v1002_v62  ;;  %v1115_v7 = vpop.permute.xlu0 %1114 }
  0xc1   : > { %v1118_v9 = vsel %vm1116_vm10, %v1113_v6, %v1115_v7  ;;  %v1129_v10 = vsel %vm282_vm1, %v1115_v7, 0  ;;  %2462 = vmatprep.mubr.msk.bf16.mxu1 %vm2568_vm0, %v2567_v0 }
  0xc2   : > { %2336 = vmatprep.subr.msk.bf16.mxu0 %vm282_vm1, %v1118_v9  ;;  %2461 = vmatpush3.bf16.msra.mxu1 %v1129_v10 }
  0xc3   : > { %2466 = vmatprep.subr.bf16.mxu1 %v2567_v0 }
  0xc6   : > { %2334 = vmatmul.mubr.msk.bf16.vlgmr.msra.gmra.mxu0 %vm278_vm2, %v1002_v62 }
  0xc7   : > { %1146 = vmatpush1.bf16.msra.mxu0 %v1123_v11  ;;  %1163 = vmatprep.mubr.bf16.mxu0 %v2569_v1 }
  0xc8   : > { %2463 = vmatmul.mubr.msk.bf16.vlgmr.msra.gmra.mxu1 %vm278_vm2, %v1109_v12 }
  0xc9   : > { %2468 = vmatprep.mubr.msk.bf16.mxu1 %vm2568_vm0, %v2567_v0 }
  0xce   : > { %2337 = vmatmul.mubr.msk.bf16.vlgmr.msra.gmra.mxu0 %vm278_vm2, %v1109_v12 }
  0xcf   : > { %1346 = vmatprep.mubr.bf16.mxu0 %v2569_v1 }
 0x147   : > { %v367_v13 = vpop.f32.mrf.mxu1 }
 0x149   : > { %v2416_v14 = vpop.f32.mrf.mxu1 }
 0x14b   : > { %v370_v15 = vpop.f32.mrf.mxu1 }
 0x14d   : > { %v2417_v17 = vpop.f32.mrf.mxu1 }
 0x14e   : > { %v326_v16 = vpop.f32.mrf.mxu0 }
 0x150   : > { %v328_v18 = vpop.f32.mrf.mxu0  ;;  %v460_v19 = vpop.f32.mrf.mxu1 }
 0x151   : > { %v461_v4 = vadd.f32 %v460_v19, %v367_v13 }
 0x152   : > { %v330_v20 = vpop.f32.mrf.mxu0  ;;  %v2422_v21 = vpop.f32.mrf.mxu1 }
 0x154   : > { %v331_v22 = vpop.f32.mrf.mxu0  ;;  %v463_v23 = vpop.f32.mrf.mxu1 }
 0x156   : > { %v419_v24 = vpop.f32.mrf.mxu0  ;;  %v2423_v25 = vpop.f32.mrf.mxu1 }
 0x157   : > { %v420_v7 = vadd.f32 %v419_v24, %v326_v16 }
 0x158   : > { %v421_v26 = vpop.f32.mrf.mxu0  ;;  %v564_v27 = vpop.f32.mrf.mxu1 }
 0x159   : > { %v572_v8 = vadd.f32 %v564_v27, %v461_v4  ;;  %v422_v11 = vadd.f32 %v421_v26, %v328_v18 }
 0x15a   : > { %v423_v28 = vpop.f32.mrf.mxu0  ;;  %v2428_v29 = vpop.f32.mrf.mxu1 }
 0x15c   : > { %v424_v30 = vpop.f32.mrf.mxu0  ;;  %v567_v31 = vpop.f32.mrf.mxu1 }
 0x15d   : > { %v1233_v31 = vlaneseq }
 0x15e   : > { %v523_v32 = vpop.f32.mrf.mxu0  ;;  %v2429_v33 = vpop.f32.mrf.mxu1 }
 0x15f   : > { %v570_v12 = vadd.f32 %v523_v32, %v420_v7 }
 0x160   : > { %v525_v34 = vpop.f32.mrf.mxu0  ;;  %v671_v35 = vpop.f32.mrf.mxu1 }
 0x161   : > { %v679_v14 = vadd.f32 %v671_v35, %v572_v8  ;;  %v571_v20 = vadd.f32 %v525_v34, %v422_v11 }
 0x162   : > { %v527_v36 = vpop.f32.mrf.mxu0  ;;  %v2434_v37 = vpop.f32.mrf.mxu1 }
 0x163   : > { %v1234_v37 = vshrl.u32 %v1233_v31, 7 }
 0x164   : > { %v528_v38 = vpop.f32.mrf.mxu0  ;;  %v674_v39 = vpop.f32.mrf.mxu1 }
 0x166   : > { %v630_v40 = vpop.f32.mrf.mxu0  ;;  %v2435_v41 = vpop.f32.mrf.mxu1 }
 0x167   : > { %v677_v21 = vadd.f32 %v630_v40, %v570_v12  ;;  %v1219_v41 = vpop.permute.xlu0 %1218  ;;  %v2823_v12 = vld [vmem:[%s2968_s4] sm:$0xf] }
 0x168   : > { %v632_v42 = vpop.f32.mrf.mxu0  ;;  %v778_v43 = vpop.f32.mrf.mxu1 }
 0x169   : > { %v786_v22 = vadd.f32 %v778_v43, %v679_v14  ;;  %v678_v28 = vadd.f32 %v632_v42, %v571_v20 }
 0x16a   : > { %v634_v44 = vpop.f32.mrf.mxu0  ;;  %v2440_v45 = vpop.f32.mrf.mxu1 }
 0x16c   : > { %v635_v46 = vpop.f32.mrf.mxu0  ;;  %v781_v47 = vpop.f32.mrf.mxu1 }
 0x16d   : > { %v1235_v46 = vsub.s32 0, %v1234_v37  ;;  %v1239_v47 = vsub.s32 1, %v1234_v37 }
 0x16e   : > { %v737_v48 = vpop.f32.mrf.mxu0  ;;  %v2441_v49 = vpop.f32.mrf.mxu1 }
 0x16f   : > { %v784_v29 = vadd.f32 %v737_v48, %v677_v21  ;;  %v1243_v49 = vsub.s32 2, %v1234_v37  ;;  %v2230_v21 = vld [vmem:[%s2969_s5] sm:$0xff] }
 0x170   : > { %v739_v50 = vpop.f32.mrf.mxu0  ;;  %v885_v51 = vpop.f32.mrf.mxu1 }
 0x171   : > { %v893_v30 = vadd.f32 %v885_v51, %v786_v22  ;;  %v785_v16 = vadd.f32 %v739_v50, %v678_v28 }
 0x172   : > { %v741_v52 = vpop.f32.mrf.mxu0  ;;  %v2446_v53 = vpop.f32.mrf.mxu1 }
 0x173   : > { %v1231_v53 = vld [vmem:[%s2964_s0] sm:$0x7] }
 0x174   : > { %v742_v54 = vpop.f32.mrf.mxu0  ;;  %v888_v55 = vpop.f32.mrf.mxu1 }
 0x176   : > { %v844_v56 = vpop.f32.mrf.mxu0  ;;  %v2447_v57 = vpop.f32.mrf.mxu1 }
 0x177   : > { %v891_v24 = vadd.f32 %v844_v56, %v784_v29  ;;  %v1236_v56 = vrot.slane %v1231_v53, %v1235_v46 }
 0x178   : > { %v846_v58 = vpop.f32.mrf.mxu0  ;;  %v992_v59 = vpop.f32.mrf.mxu1 }
 0x179   : > { %v1000_v27 = vadd.f32 %v992_v59, %v893_v30  ;;  %v892_v26 = vadd.f32 %v846_v58, %v785_v16  ;;  %v1240_v58 = vrot.slane %v1231_v53, %v1239_v47 }
 0x17a   : > { %v848_v60 = vpop.f32.mrf.mxu0  ;;  %v2452_v61 = vpop.f32.mrf.mxu1 }
 0x17c   : > { %v849_v62 = vpop.f32.mrf.mxu0  ;;  %v995_v63 = vpop.f32.mrf.mxu1 }
 0x17d   : > { %v1244_v62 = vrot.slane %v1231_v53, %v1243_v49 }
 0x17e   : > { %v951_v2 = vpop.f32.mrf.mxu0  ;;  %v2453_v3 = vpop.f32.mrf.mxu1 }
 0x17f   : > { %v998_v32 = vadd.f32 %v951_v2, %v891_v24 }
 0x180   : > { %v953_v5 = vpop.f32.mrf.mxu0  ;;  %v1099_v6 = vpop.f32.mrf.mxu1 }
 0x181   : > { %v1107_v35 = vadd.f32 %v1099_v6, %v1000_v27  ;;  %v999_v38 = vadd.f32 %v953_v5, %v892_v26 }
 0x182   : > { %v955_v9 = vpop.f32.mrf.mxu0  ;;  %v2458_v10 = vpop.f32.mrf.mxu1 }
 0x184   : > { %v956_v15 = vpop.f32.mrf.mxu0  ;;  %v1102_v17 = vpop.f32.mrf.mxu1 }
 0x185   : > { %v2341_v17 = vcombine.low %v2823_v12, %v2823_v12 }
 0x186   : > { %v1058_v23 = vpop.f32.mrf.mxu0  ;;  %v2459_v25 = vpop.f32.mrf.mxu1 }
 0x187   : > { %v1105_v39 = vadd.f32 %v1058_v23, %v998_v32 }
 0x188   : > { %v1060_v13 = vpop.f32.mrf.mxu0  ;;  %v1206_v19 = vpop.f32.mrf.mxu1 }
 0x189   : > { %v1214_v40 = vadd.f32 %v1206_v19, %v1107_v35  ;;  %v1106_v44 = vadd.f32 %v1060_v13, %v999_v38 }
 0x18a   : > { %v1062_v33 = vpop.f32.mrf.mxu0  ;;  %v2464_v18 = vpop.f32.mrf.mxu1 }
 0x18b   : > { %v1223_v50 = vadd.f32 %v1219_v41, %v1214_v40 }
 0x18c   : > { %v1063_v36 = vpop.f32.mrf.mxu0  ;;  %v1209_v34 = vpop.f32.mrf.mxu1 }
 0x18d   : > { %v1226_v60 = vmax.f32 %v1223_v50, 0.0 }
 0x18e   : > { %v1165_v42 = vpop.f32.mrf.mxu0  ;;  %v2465_v43 = vpop.f32.mrf.mxu1 }
 0x18f   : > { %v1212_v45 = vadd.f32 %v1165_v42, %v1105_v39  ;;  %v1250_v4 = vmul.f32 %v1244_v62, %v1226_v60 }
 0x190   : > { %v1167_v48 = vpop.f32.mrf.mxu0 }
 0x191   : > { %v1221_v51 = vadd.f32 %v1219_v41, %v1212_v45  ;;  %v1213_v52 = vadd.f32 %v1167_v48, %v1106_v44  ;;  %v2375_v5 = vpack.c.bf16 %v1250_v4, %v1250_v4 }
 0x192   : > { %v1169_v54 = vpop.f32.mrf.mxu0 }
 0x193   : > { %v1224_v55 = vmax.f32 %v1221_v51, 0.0  ;;  %v1222_v57 = vadd.f32 %v1219_v41, %v1213_v52 }
 0x194   : > { %v1170_v59 = vpop.f32.mrf.mxu0 }
 0x195   : > { %v1225_v61 = vmax.f32 %v1222_v57, 0.0  ;;  %v1248_v63 = vmul.f32 %v1236_v56, %v1224_v55 }
 0x197   : > { %v1249_v2 = vmul.f32 %v1240_v58, %v1225_v61 }
 0x199   : > { %v2374_v3 = vpack.c.bf16 %v1249_v2, %v1248_v63 }
 0x19b   : > { %1262 = vrot.lane.b32.xlu1 %v2374_v3, %s2586_s27 }
 0x19f   : > { %1264 = vrot.lane.b32.xlu1 %v2375_v5, %s2586_s27 }
 0x20d   : > { %v1263_v6 = vpop.permute.xlu1 %1262 }
 0x20e   : > { %v1266_v7 = vrot.slane %v1263_v6, 4 }
 0x210   : > { %v1268_v8 = vsel %vm1267_vm15, %v1266_v7, %v1263_v6 }
 0x211   : > { %1275 = vst.msk [vmem:[#allocation2] sm:$0xff] %vm1274_vm11, %v1268_v8  ;;  %v1265_v9 = vpop.permute.xlu1 %1264 }
 0x212   : > { %v1269_v10 = vsel %vm1267_vm15, %v1266_v7, %v1265_v9 }
 0x213   : > { %1277 = vst.msk [vmem:[#allocation2 + $0x8] sm:$0xf] %vm1276_vm12, %v1269_v10 }
 0x218   : > { %v1278_v11 = vld [vmem:[#allocation2] sm:$0xff] }
 0x219   : > { %v2342_v14 = vcombine.low %v1278_v11, %v1278_v11  ;;  %v2343_v15 = vcombine.high %v1278_v11, %v1278_v11 }
 0x21a   : > { %v2557_v20 = vld [vmem:[#allocation2 + $0x8] ss:$0 sps:$4 sm:$0xff]  }
 0x21b   : > { %1296 = vrot.lane.b32.xlu1 %v2343_v15, %s2570_s29  ;;  %1294 = vrot.lane.b32.xlu0 %v2342_v14, %s2570_s29  ;;  %v1405_v24 = vsel %vm282_vm1, %v2557_v20, 0  ;;  %v1399_v27 = vsel %vm282_vm1, %v2342_v14, 0 }
 0x21f   : > { %1284 = vrot.lane.b32.xlu1 %v2341_v17, %s2571_s30  ;;  %1298 = vrot.lane.b32.xlu0 %v2557_v20, %s2570_s29 }
 0x223   : > { %1492 = vrot.lane.b32.xlu1 %v2343_v15, %s2572_s7  ;;  %1490 = vrot.lane.b32.xlu0 %v2342_v14, %s2572_s7 }
 0x227   : > { %1488 = vrot.lane.b32.xlu1 %v2341_v17, %s2573_s8  ;;  %1494 = vrot.lane.b32.xlu0 %v2557_v20, %s2572_s7  ;;  %s2521_s7 = smul.u32 24, %s2972_s22 }
 0x22b   : > { %1598 = vrot.lane.b32.xlu1 %v2343_v15, %s2574_s9  ;;  %1596 = vrot.lane.b32.xlu0 %v2342_v14, %s2574_s9 }
 0x22f   : > { %1594 = vrot.lane.b32.xlu1 %v2341_v17, %s2575_s10  ;;  %1600 = vrot.lane.b32.xlu0 %v2557_v20, %s2574_s9  ;;  %s251_s10 = scalar_lea.vmem %s2970_s6, %s2521_s7 }
 0x233   : > { %1704 = vrot.lane.b32.xlu1 %v2343_v15, %s2576_s11  ;;  %1702 = vrot.lane.b32.xlu0 %v2342_v14, %s2576_s11 }
 0x237   : > { %1700 = vrot.lane.b32.xlu1 %v2341_v17, %s2577_s12  ;;  %1706 = vrot.lane.b32.xlu0 %v2557_v20, %s2576_s11 }
 0x23b   : > { %1810 = vrot.lane.b32.xlu1 %v2343_v15, %s2578_s13  ;;  %1808 = vrot.lane.b32.xlu0 %v2342_v14, %s2578_s13 }
 0x23f   : > { %1806 = vrot.lane.b32.xlu1 %v2341_v17, %s2579_s14  ;;  %1812 = vrot.lane.b32.xlu0 %v2557_v20, %s2578_s13 }
 0x243   : > { %1916 = vrot.lane.b32.xlu1 %v2343_v15, %s2580_s15  ;;  %1914 = vrot.lane.b32.xlu0 %v2342_v14, %s2580_s15 }
 0x247   : > { %1912 = vrot.lane.b32.xlu1 %v2341_v17, %s2581_s16  ;;  %1918 = vrot.lane.b32.xlu0 %v2557_v20, %s2580_s15 }
 0x24b   : > { %2022 = vrot.lane.b32.xlu1 %v2343_v15, %s2582_s17  ;;  %2020 = vrot.lane.b32.xlu0 %v2342_v14, %s2582_s17 }
 0x24f   : > { %2018 = vrot.lane.b32.xlu1 %v2341_v17, %s2583_s18  ;;  %2024 = vrot.lane.b32.xlu0 %v2557_v20, %s2582_s17 }
 0x253   : > { %2128 = vrot.lane.b32.xlu1 %v2343_v15, %s2584_s19  ;;  %2126 = vrot.lane.b32.xlu0 %v2342_v14, %s2584_s19 }
 0x257   : > { %2130 = vrot.lane.b32.xlu0 %v2557_v20, %s2584_s19  ;;  %2124 = vrot.lane.b32.xlu1 %v2341_v17, %s2585_s20 }
 0x25b   : > { %2233 = vperm.xlu0 %2550, %v2230_v21  }
 0x28d   : > { %v1295_v22 = vpop.permute.xlu0 %1294  ;;  %v1297_v23 = vpop.permute.xlu1 %1296 }
 0x28e   : > { %v1300_v25 = vsel %vm275_vm3, %v1295_v22, %v1297_v23 }
 0x28f   : > { %v1306_v19 = vsel %vm282_vm1, %v1300_v25, 0 }
 0x291   : > { %v1299_v28 = vpop.permute.xlu0 %1298  ;;  %v1285_v29 = vpop.permute.xlu1 %1284 }
 0x292   : > { %v1301_v30 = vsel %vm275_vm3, %v1297_v23, %v1299_v28  ;;  %v1312_v13 = vsel %vm282_vm1, %v1299_v28, 0 }
 0x293   : > { %2345 = vmatprep.subr.msk.bf16.mxu0 %vm282_vm1, %v1301_v30  ;;  %2467 = vmatpush3.bf16.msra.mxu1 %v1312_v13 }
 0x294   : > { %1329 = vmatpush1.bf16.msra.mxu0 %v1306_v19  ;;  %2472 = vmatprep.subr.bf16.mxu1 %v2567_v0 }
 0x295   : > { %v1491_v31 = vpop.permute.xlu0 %1490  ;;  %2348 = vmatprep.subr.msk.bf16.mxu0 %vm282_vm1, %v2343_v15  ;;  %v1493_v16 = vpop.permute.xlu1 %1492 }
 0x296   : > { %2469 = vmatmul.mubr.msk.bf16.vlgmr.msra.gmra.mxu1 %vm278_vm2, %v1285_v29  ;;  %v1496_v32 = vsel %vm474_vm4, %v1491_v31, %v1493_v16 }
 0x297   : > { %2346 = vmatmul.mubr.msk.bf16.vlgmr.msra.gmra.mxu0 %vm278_vm2, %v1285_v29  ;;  %2473 = vmatpush3.bf16.msra.mxu1 %v1405_v24  ;;  %v1502_v37 = vsel %vm282_vm1, %v1496_v32, 0 }
 0x298   : > { %1422 = vmatpush1.bf16.msra.mxu0 %v1399_v27  ;;  %2474 = vmatprep.mubr.msk.bf16.mxu1 %vm2568_vm0, %v2567_v0 }
 0x299   : > { %v1495_v33 = vpop.permute.xlu0 %1494  ;;  %v1489_v18 = vpop.permute.xlu1 %1488  ;;  %2478 = vmatprep.subr.bf16.mxu1 %v2567_v0  ;;  %1439 = vmatprep.mubr.bf16.mxu0 %v2569_v1 }
 0x29a   : > { %v1497_v26 = vsel %vm474_vm4, %v1493_v16, %v1495_v33  ;;  %v1508_v34 = vsel %vm282_vm1, %v1495_v33, 0 }
 0x29b   : > { %2351 = vmatprep.subr.msk.bf16.mxu0 %vm282_vm1, %v1497_v26 }
 0x29d   : > { %v1597_v35 = vpop.permute.xlu0 %1596  ;;  %v1599_v36 = vpop.permute.xlu1 %1598 }
 0x29e   : > { %2475 = vmatmul.mubr.msk.bf16.vlgmr.msra.gmra.mxu1 %vm278_vm2, %v2823_v12  ;;  %v1602_v41 = vsel %vm581_vm5, %v1597_v35, %v1599_v36 }
 0x29f   : > { %2479 = vmatpush3.bf16.msra.mxu1 %v1508_v34  ;;  %2349 = vmatmul.mubr.msk.bf16.vlgmr.msra.gmra.mxu0 %vm278_vm2, %v2823_v12  ;;  %v1608_v45 = vsel %vm282_vm1, %v1602_v41, 0 }
 0x2a0   : > { %1525 = vmatpush1.bf16.msra.mxu0 %v1502_v37  ;;  %2480 = vmatprep.mubr.msk.bf16.mxu1 %vm2568_vm0, %v2567_v0 }
 0x2a1   : > { %v1601_v38 = vpop.permute.xlu0 %1600  ;;  %v1595_v39 = vpop.permute.xlu1 %1594  ;;  %2484 = vmatprep.subr.bf16.mxu1 %v2567_v0  ;;  %1542 = vmatprep.mubr.bf16.mxu0 %v2569_v1 }
 0x2a2   : > { %v1603_v40 = vsel %vm581_vm5, %v1599_v36, %v1601_v38  ;;  %v1614_v44 = vsel %vm282_vm1, %v1601_v38, 0 }
 0x2a3   : > { %2354 = vmatprep.subr.msk.bf16.mxu0 %vm282_vm1, %v1603_v40 }
 0x2a5   : > { %v1703_v42 = vpop.permute.xlu0 %1702  ;;  %v1705_v43 = vpop.permute.xlu1 %1704 }
 0x2a6   : > { %2481 = vmatmul.mubr.msk.bf16.vlgmr.msra.gmra.mxu1 %vm278_vm2, %v1489_v18  ;;  %v1708_v49 = vsel %vm688_vm6, %v1703_v42, %v1705_v43 }
 0x2a7   : > { %2485 = vmatpush3.bf16.msra.mxu1 %v1614_v44  ;;  %2352 = vmatmul.mubr.msk.bf16.vlgmr.msra.gmra.mxu0 %vm278_vm2, %v1489_v18  ;;  %v1714_v53 = vsel %vm282_vm1, %v1708_v49, 0 }
 0x2a8   : > { %1631 = vmatpush1.bf16.msra.mxu0 %v1608_v45  ;;  %2486 = vmatprep.mubr.msk.bf16.mxu1 %vm2568_vm0, %v2567_v0 }
 0x2a9   : > { %v1707_v46 = vpop.permute.xlu0 %1706  ;;  %v1701_v47 = vpop.permute.xlu1 %1700  ;;  %2490 = vmatprep.subr.bf16.mxu1 %v2567_v0  ;;  %1648 = vmatprep.mubr.bf16.mxu0 %v2569_v1 }
 0x2aa   : > { %v1709_v48 = vsel %vm688_vm6, %v1705_v43, %v1707_v46  ;;  %v1720_v52 = vsel %vm282_vm1, %v1707_v46, 0 }
 0x2ab   : > { %2357 = vmatprep.subr.msk.bf16.mxu0 %vm282_vm1, %v1709_v48 }
 0x2ad   : > { %v1809_v50 = vpop.permute.xlu0 %1808  ;;  %v1811_v51 = vpop.permute.xlu1 %1810 }
 0x2ae   : > { %2487 = vmatmul.mubr.msk.bf16.vlgmr.msra.gmra.mxu1 %vm278_vm2, %v1595_v39  ;;  %v1814_v57 = vsel %vm795_vm7, %v1809_v50, %v1811_v51 }
 0x2af   : > { %2491 = vmatpush3.bf16.msra.mxu1 %v1720_v52  ;;  %2355 = vmatmul.mubr.msk.bf16.vlgmr.msra.gmra.mxu0 %vm278_vm2, %v1595_v39  ;;  %v1820_v61 = vsel %vm282_vm1, %v1814_v57, 0 }
 0x2b0   : > { %1737 = vmatpush1.bf16.msra.mxu0 %v1714_v53  ;;  %2492 = vmatprep.mubr.msk.bf16.mxu1 %vm2568_vm0, %v2567_v0 }
 0x2b1   : > { %v1813_v54 = vpop.permute.xlu0 %1812  ;;  %v1807_v55 = vpop.permute.xlu1 %1806  ;;  %2496 = vmatprep.subr.bf16.mxu1 %v2567_v0  ;;  %1754 = vmatprep.mubr.bf16.mxu0 %v2569_v1 }
 0x2b2   : > { %v1815_v56 = vsel %vm795_vm7, %v1811_v51, %v1813_v54  ;;  %v1826_v60 = vsel %vm282_vm1, %v1813_v54, 0 }
 0x2b3   : > { %2360 = vmatprep.subr.msk.bf16.mxu0 %vm282_vm1, %v1815_v56 }
 0x2b5   : > { %v1915_v58 = vpop.permute.xlu0 %1914  ;;  %v1917_v59 = vpop.permute.xlu1 %1916 }
 0x2b6   : > { %2493 = vmatmul.mubr.msk.bf16.vlgmr.msra.gmra.mxu1 %vm278_vm2, %v1701_v47  ;;  %v1920_v3 = vsel %vm902_vm8, %v1915_v58, %v1917_v59 }
 0x2b7   : > { %2497 = vmatpush3.bf16.msra.mxu1 %v1826_v60  ;;  %2358 = vmatmul.mubr.msk.bf16.vlgmr.msra.gmra.mxu0 %vm278_vm2, %v1701_v47  ;;  %v1926_v7 = vsel %vm282_vm1, %v1920_v3, 0 }
 0x2b8   : > { %1843 = vmatpush1.bf16.msra.mxu0 %v1820_v61  ;;  %2498 = vmatprep.mubr.msk.bf16.mxu1 %vm2568_vm0, %v2567_v0 }
 0x2b9   : > { %v1919_v62 = vpop.permute.xlu0 %1918  ;;  %v1913_v63 = vpop.permute.xlu1 %1912  ;;  %2502 = vmatprep.subr.bf16.mxu1 %v2567_v0  ;;  %1860 = vmatprep.mubr.bf16.mxu0 %v2569_v1 }
 0x2ba   : > { %v1921_v2 = vsel %vm902_vm8, %v1917_v59, %v1919_v62  ;;  %v1932_v6 = vsel %vm282_vm1, %v1919_v62, 0 }
 0x2bb   : > { %2363 = vmatprep.subr.msk.bf16.mxu0 %vm282_vm1, %v1921_v2 }
 0x2bd   : > { %v2021_v4 = vpop.permute.xlu0 %2020  ;;  %v2023_v5 = vpop.permute.xlu1 %2022 }
 0x2be   : > { %2499 = vmatmul.mubr.msk.bf16.vlgmr.msra.gmra.mxu1 %vm278_vm2, %v1807_v55  ;;  %v2026_v11 = vsel %vm1009_vm9, %v2021_v4, %v2023_v5 }
 0x2bf   : > { %2503 = vmatpush3.bf16.msra.mxu1 %v1932_v6  ;;  %2361 = vmatmul.mubr.msk.bf16.vlgmr.msra.gmra.mxu0 %vm278_vm2, %v1807_v55  ;;  %v2032_v15 = vsel %vm282_vm1, %v2026_v11, 0 }
 0x2c0   : > { %1949 = vmatpush1.bf16.msra.mxu0 %v1926_v7  ;;  %2504 = vmatprep.mubr.msk.bf16.mxu1 %vm2568_vm0, %v2567_v0 }
 0x2c1   : > { %v2025_v8 = vpop.permute.xlu0 %2024  ;;  %2508 = vmatprep.subr.bf16.mxu1 %v2567_v0  ;;  %1966 = vmatprep.mubr.bf16.mxu0 %v2569_v1  ;;  %v2019_v10 = vpop.permute.xlu1 %2018 }
 0x2c2   : > { %v2027_v9 = vsel %vm1009_vm9, %v2023_v5, %v2025_v8  ;;  %v2038_v14 = vsel %vm282_vm1, %v2025_v8, 0 }
 0x2c3   : > { %2366 = vmatprep.subr.msk.bf16.mxu0 %vm282_vm1, %v2027_v9 }
 0x2c5   : > { %v2127_v12 = vpop.permute.xlu0 %2126  ;;  %v2129_v17 = vpop.permute.xlu1 %2128 }
 0x2c6   : > { %2505 = vmatmul.mubr.msk.bf16.vlgmr.msra.gmra.mxu1 %vm278_vm2, %v1913_v63  ;;  %v2132_v22 = vsel %vm1116_vm10, %v2127_v12, %v2129_v17 }
 0x2c7   : > { %2509 = vmatpush3.bf16.msra.mxu1 %v2038_v14  ;;  %2364 = vmatmul.mubr.msk.bf16.vlgmr.msra.gmra.mxu0 %vm278_vm2, %v1913_v63  ;;  %v2138_v25 = vsel %vm282_vm1, %v2132_v22, 0 }
 0x2c8   : > { %2055 = vmatpush1.bf16.msra.mxu0 %v2032_v15  ;;  %2510 = vmatprep.mubr.msk.bf16.mxu1 %vm2568_vm0, %v2567_v0 }
 0x2c9   : > { %v2131_v20 = vpop.permute.xlu0 %2130  ;;  %2514 = vmatprep.subr.bf16.mxu1 %v2567_v0  ;;  %2072 = vmatprep.mubr.bf16.mxu0 %v2569_v1  ;;  %v2125_v28 = vpop.permute.xlu1 %2124 }
 0x2ca   : > { %v2133_v21 = vsel %vm1116_vm10, %v2129_v17, %v2131_v20  ;;  %v2144_v23 = vsel %vm282_vm1, %v2131_v20, 0 }
 0x2cb   : > { %2369 = vmatprep.subr.msk.bf16.mxu0 %vm282_vm1, %v2133_v21 }
 0x2ce   : > { %2511 = vmatmul.mubr.msk.bf16.vlgmr.msra.gmra.mxu1 %vm278_vm2, %v2019_v10 }
 0x2cf   : > { %2515 = vmatpush3.bf16.msra.mxu1 %v2144_v23  ;;  %2367 = vmatmul.mubr.msk.bf16.vlgmr.msra.gmra.mxu0 %vm278_vm2, %v2019_v10 }
 0x2d0   : > { %2161 = vmatpush1.bf16.msra.mxu0 %v2138_v25  ;;  %2516 = vmatprep.mubr.msk.bf16.mxu1 %vm2568_vm0, %v2567_v0  ;;  %vm2244_vm0 = vcmask 261120  }
 0x2d1   : > { %2178 = vmatprep.mubr.bf16.mxu0 %v2569_v1 }
 0x2d6   : > { %2517 = vmatmul.mubr.msk.bf16.vlgmr.msra.gmra.mxu1 %vm278_vm2, %v2125_v28 }
 0x2d7   : > { %2370 = vmatmul.mubr.msk.bf16.vlgmr.msra.gmra.mxu0 %vm278_vm2, %v2125_v28 }
 0x356   : > { %v1389_v29 = vpop.f32.mrf.mxu1 }
 0x357   : > { %v1348_v30 = vpop.f32.mrf.mxu0 }
 0x358   : > { %v2470_v13 = vpop.f32.mrf.mxu1 }
 0x359   : > { %v1350_v19 = vpop.f32.mrf.mxu0 }
 0x35a   : > { %v1392_v31 = vpop.f32.mrf.mxu1 }
 0x35b   : > { %v1352_v16 = vpop.f32.mrf.mxu0 }
 0x35c   : > { %v2471_v24 = vpop.f32.mrf.mxu1 }
 0x35d   : > { %v1353_v27 = vpop.f32.mrf.mxu0 }
 0x35e   : > { %v1482_v33 = vpop.f32.mrf.mxu1 }
 0x35f   : > { %v1441_v18 = vpop.f32.mrf.mxu0  ;;  %v1483_v9 = vadd.f32 %v1482_v33, %v1389_v29 }
 0x360   : > { %v2476_v26 = vpop.f32.mrf.mxu1  ;;  %v1442_v11 = vadd.f32 %v1441_v18, %v1348_v30 }
 0x361   : > { %v1443_v32 = vpop.f32.mrf.mxu0 }
 0x362   : > { %v1485_v0 = vpop.f32.mrf.mxu1  ;;  %v1444_v17 = vadd.f32 %v1443_v32, %v1350_v19 }
 0x363   : > { %v1445_v35 = vpop.f32.mrf.mxu0 }
 0x364   : > { %v2477_v1 = vpop.f32.mrf.mxu1 }
 0x365   : > { %v1446_v36 = vpop.f32.mrf.mxu0 }
 0x366   : > { %v1585_v34 = vpop.f32.mrf.mxu1 }
 0x367   : > { %v1544_v37 = vpop.f32.mrf.mxu0  ;;  %v1593_v14 = vadd.f32 %v1585_v34, %v1483_v9 }
 0x368   : > { %v2482_v38 = vpop.f32.mrf.mxu1  ;;  %v1591_v20 = vadd.f32 %v1544_v37, %v1442_v11 }
 0x369   : > { %v1546_v39 = vpop.f32.mrf.mxu0 }
 0x36a   : > { %v1588_v40 = vpop.f32.mrf.mxu1  ;;  %v1592_v25 = vadd.f32 %v1546_v39, %v1444_v17 }
 0x36b   : > { %v1548_v41 = vpop.f32.mrf.mxu0 }
 0x36c   : > { %v2483_v42 = vpop.f32.mrf.mxu1 }
 0x36d   : > { %v1549_v43 = vpop.f32.mrf.mxu0 }
 0x36e   : > { %v1691_v44 = vpop.f32.mrf.mxu1  ;;  %v2234_v43 = vpop.permute.xlu0 %2233 }
 0x36f   : > { %v1650_v45 = vpop.f32.mrf.mxu0  ;;  %v1699_v22 = vadd.f32 %v1691_v44, %v1593_v14 }
 0x370   : > { %v2488_v46 = vpop.f32.mrf.mxu1  ;;  %v1697_v28 = vadd.f32 %v1650_v45, %v1591_v20 }
 0x371   : > { %v1652_v47 = vpop.f32.mrf.mxu0 }
 0x372   : > { %v1694_v48 = vpop.f32.mrf.mxu1  ;;  %v1698_v24 = vadd.f32 %v1652_v47, %v1592_v25 }
 0x373   : > { %v1654_v49 = vpop.f32.mrf.mxu0 }
 0x374   : > { %v2489_v50 = vpop.f32.mrf.mxu1 }
 0x375   : > { %v1655_v51 = vpop.f32.mrf.mxu0 }
 0x376   : > { %v1797_v52 = vpop.f32.mrf.mxu1 }
 0x377   : > { %v1756_v53 = vpop.f32.mrf.mxu0  ;;  %v1805_v31 = vadd.f32 %v1797_v52, %v1699_v22 }
 0x378   : > { %v2494_v54 = vpop.f32.mrf.mxu1  ;;  %v1803_v27 = vadd.f32 %v1756_v53, %v1697_v28 }
 0x379   : > { %v1758_v55 = vpop.f32.mrf.mxu0 }
 0x37a   : > { %v1800_v56 = vpop.f32.mrf.mxu1  ;;  %v1804_v30 = vadd.f32 %v1758_v55, %v1698_v24 }
 0x37b   : > { %v1760_v57 = vpop.f32.mrf.mxu0 }
 0x37c   : > { %v2495_v58 = vpop.f32.mrf.mxu1 }
 0x37d   : > { %v1761_v59 = vpop.f32.mrf.mxu0 }
 0x37e   : > { %v1903_v60 = vpop.f32.mrf.mxu1 }
 0x37f   : > { %v1862_v61 = vpop.f32.mrf.mxu0  ;;  %v1911_v29 = vadd.f32 %v1903_v60, %v1805_v31 }
 0x380   : > { %v2500_v62 = vpop.f32.mrf.mxu1  ;;  %v1909_v18 = vadd.f32 %v1862_v61, %v1803_v27 }
 0x381   : > { %v1864_v63 = vpop.f32.mrf.mxu0 }
 0x382   : > { %v1906_v2 = vpop.f32.mrf.mxu1  ;;  %v1910_v32 = vadd.f32 %v1864_v63, %v1804_v30 }
 0x383   : > { %v1866_v3 = vpop.f32.mrf.mxu0 }
 0x384   : > { %v2501_v4 = vpop.f32.mrf.mxu1 }
 0x385   : > { %v1867_v5 = vpop.f32.mrf.mxu0 }
 0x386   : > { %v2009_v6 = vpop.f32.mrf.mxu1 }
 0x387   : > { %v1968_v7 = vpop.f32.mrf.mxu0  ;;  %v2017_v35 = vadd.f32 %v2009_v6, %v1911_v29 }
 0x388   : > { %v2506_v8 = vpop.f32.mrf.mxu1  ;;  %v2015_v1 = vadd.f32 %v1968_v7, %v1909_v18 }
 0x389   : > { %v1970_v10 = vpop.f32.mrf.mxu0 }
 0x38a   : > { %v2012_v12 = vpop.f32.mrf.mxu1  ;;  %v2016_v38 = vadd.f32 %v1970_v10, %v1910_v32 }
 0x38b   : > { %v1972_v15 = vpop.f32.mrf.mxu0 }
 0x38c   : > { %v2507_v21 = vpop.f32.mrf.mxu1 }
 0x38d   : > { %v1973_v23 = vpop.f32.mrf.mxu0 }
 0x38e   : > { %v2115_v13 = vpop.f32.mrf.mxu1 }
 0x38f   : > { %v2074_v16 = vpop.f32.mrf.mxu0  ;;  %v2123_v34 = vadd.f32 %v2115_v13, %v2017_v35 }
 0x390   : > { %v2512_v26 = vpop.f32.mrf.mxu1  ;;  %v2121_v39 = vadd.f32 %v2074_v16, %v2015_v1 }
 0x391   : > { %v2076_v33 = vpop.f32.mrf.mxu0 }
 0x392   : > { %v2118_v0 = vpop.f32.mrf.mxu1  ;;  %v2122_v44 = vadd.f32 %v2076_v33, %v2016_v38 }
 0x393   : > { %v2078_v19 = vpop.f32.mrf.mxu0 }
 0x394   : > { %v2513_v36 = vpop.f32.mrf.mxu1 }
 0x395   : > { %v2079_v37 = vpop.f32.mrf.mxu0 }
 0x396   : > { %v2221_v40 = vpop.f32.mrf.mxu1 }
 0x397   : > { %v2229_v41 = vadd.f32 %v2221_v40, %v2123_v34  ;;  %v2180_v42 = vpop.f32.mrf.mxu0 }
 0x398   : > { %v2227_v45 = vadd.f32 %v2180_v42, %v2121_v39  ;;  %v2518_v46 = vpop.f32.mrf.mxu1 }
 0x399   : > { %v2238_v47 = vadd.f32 %v2234_v43, %v2229_v41  ;;  %v2182_v48 = vpop.f32.mrf.mxu0 }
 0x39a   : > { %v2236_v49 = vadd.f32 %v2234_v43, %v2227_v45  ;;  %v2228_v50 = vadd.f32 %v2182_v48, %v2122_v44  ;;  %v2224_v51 = vpop.f32.mrf.mxu1 }
 0x39b   : > { %v2241_v52 = vmax.f32 %v2238_v47, 0.0  ;;  %v2184_v53 = vpop.f32.mrf.mxu0 }
 0x39c   : > { %v2239_v54 = vmax.f32 %v2236_v49, 0.0  ;;  %v2237_v55 = vadd.f32 %v2234_v43, %v2228_v50  ;;  %v2519_v56 = vpop.f32.mrf.mxu1 }
 0x39d   : > { %2245 = vst.msk [vmem:[%s251_s10 + $0x10] sm:$0xff] %vm2244_vm0, %v2241_v52  ;;  %v2185_v57 = vpop.f32.mrf.mxu0 }
 0x39e   : > { %2242 = vst [vmem:[%s251_s10] sm:$0xff] %v2239_v54  ;;  %v2240_v58 = vmax.f32 %v2237_v55, 0.0 }
 0x3a0   : > { %2243 = vst [vmem:[%s251_s10 + $0x8] sm:$0xff] %v2240_v58 }
 0x3a1 PF: > { %s16_s21 = sadd.s32 1, %s2565_s21  }
 0x3a2   : > { %p13_p4 = scmp.ge.s32.totalorder %s16_s21, 4  }
 0x3a4   :  { %15 = sbr.rel (!%p13_p4) target bundleno = 1 (0x1), region = 74 }

</bundles_post_ra>
